<compile_context>
chip_gen: v7x
topology: tpu7x:2x2x1
jax: 0.10.0
libtpu: 0.0.40
codegen_flags: <defaults>
</compile_context>

<pallas_src>
import functools

import jax
import jax.numpy as jnp
from jax.experimental import pallas as pl
from jax.experimental.pallas import tpu as pltpu

LANE = 128
SUBLANE = 8


def _round_up(n, m):
    return ((n + m - 1) // m) * m


# ----------------------------------------------------------------------------
# Kernel
# ----------------------------------------------------------------------------
def agent_kernel(a1_ref, a2_ref,          # SMEM PReLU slopes, shape (1,) f32
                 x_ref,                   # (TB, OBS)           f32
                 w1_ref, b1_ref,          # (OBS, HP) wdt, (1, HP) f32
                 w2_ref, b2_ref,          # (HP, HP)  wdt, (1, HP) f32
                 w3_ref, b3_ref,          # (HP, ACT) wdt, (1, ACT) f32
                 o_ref):                  # (TB, ACT) f32
    x = x_ref[...]

    # --- L2 normalize scale (F.normalize, dim=1, eps=1e-12) ---
    # rsqrt(max(sq, eps^2)) == 1 / max(||x||, eps); rsqrt runs on the EUP slot.
    # The per-row scale commutes with the first matmul, so it is folded into
    # the layer-1 result (norm reduction overlaps the first MXU push).
    sq = jnp.sum(x * x, axis=1, keepdims=True)
    inv = jax.lax.rsqrt(jnp.maximum(sq, 1e-24))

    # --- Layer 1: Linear + PReLU (bf16 weights, f32 accumulate) ---
    s1 = jnp.dot(x.astype(w1_ref.dtype), w1_ref[...],
                 preferred_element_type=jnp.float32)
    h1 = s1 * inv + b1_ref[...]
    h1 = jnp.where(h1 >= 0.0, h1, a1_ref[0] * h1)

    # --- Layer 2: Linear + PReLU ---
    h2 = jnp.dot(h1.astype(w2_ref.dtype), w2_ref[...],
                 preferred_element_type=jnp.float32) + b2_ref[...]
    h2 = jnp.where(h2 >= 0.0, h2, a2_ref[0] * h2)

    # --- Output layer: Linear, lane-narrow (ACT=4) output -> tiny writeback ---
    out = jnp.dot(h2.astype(w3_ref.dtype), w3_ref[...],
                  preferred_element_type=jnp.float32) + b3_ref[...]
    o_ref[...] = out.astype(o_ref.dtype)


# ----------------------------------------------------------------------------
# Parameter padding (logical torch-shaped params -> kernel params).
# Call ONCE at init / parameter-update time, not per forward call.
# ----------------------------------------------------------------------------
def pad_params(p, weight_dtype=jnp.bfloat16):
    obs = p["w1"].shape[0]
    h1, h2 = p["w1"].shape[1], p["w2"].shape[1]
    act = p["w3"].shape[1]
    hp = _round_up(max(h1, h2, LANE), LANE)   # hidden width padded to 128 lanes

    def pad2(a, r, c):
        return jnp.zeros((r, c), jnp.float32).at[:a.shape[0], :a.shape[1]].set(a)

    return {
        # Weights in bf16 (or f32 for parity), biases/slopes in f32.
        "w1": pad2(p["w1"], obs, hp).astype(weight_dtype),
        "b1": pad2(p["b1"], 1, hp),
        "w2": pad2(p["w2"], hp, hp).astype(weight_dtype),
        "b2": pad2(p["b2"], 1, hp),
        "w3": pad2(p["w3"], hp, act).astype(weight_dtype),   # output NOT lane-padded
        "b3": p["b3"].astype(jnp.float32),
        "a1": p["a1"].astype(jnp.float32),
        "a2": p["a2"].astype(jnp.float32),
    }


# ----------------------------------------------------------------------------
# Wrapper
# ----------------------------------------------------------------------------
@functools.partial(jax.jit, static_argnames=("tb",))
def agent_forward(x, kp, *, tb=2048):
    """x: (B, obs) float32.  kp: padded params from pad_params()."""
    B, obs = x.shape
    hp = kp["w1"].shape[1]
    act = kp["w3"].shape[1]

    # Batch tile: multiple of 8 sublanes, capped by (padded) batch size.
    b8 = _round_up(B, SUBLANE)
    tb = min(tb, b8)
    # Prefer >= 2 grid steps when the batch allows it so the "parallel" batch
    # axis can shard across v7x's two TensorCores (no effect on v5e/v6e).
    if b8 > SUBLANE and _round_up(b8, tb) // tb < 2:
        tb = max(SUBLANE, _round_up((b8 + 1) // 2, SUBLANE))
    bp = _round_up(B, tb)
    if bp != B:
        x = jnp.pad(x, ((0, bp - B), (0, 0)))   # zero rows are harmless (rsqrt eps)

    smem = pl.BlockSpec(memory_space=pltpu.MemorySpace.SMEM)

    def const(shape):
        # Constant block index across the grid -> weights stay resident in VMEM.
        return pl.BlockSpec(shape, lambda i: (0, 0))

    wbytes = sum(int(kp[k].size) * kp[k].dtype.itemsize
                 for k in ("w1", "b1", "w2", "b2", "w3", "b3"))
    cost = pl.CostEstimate(
        flops=2 * bp * (obs * hp + hp * hp + hp * act),
        transcendentals=bp,                         # one rsqrt per row
        bytes_accessed=bp * obs * 4 + wbytes + bp * act * 4,
    )

    out_p = pl.pallas_call(
        agent_kernel,
        out_shape=jax.ShapeDtypeStruct((bp, act), jnp.float32),
        grid=(bp // tb,),
        in_specs=[smem, smem,                                   # PReLU slopes
                  pl.BlockSpec((tb, obs), lambda i: (i, 0)),    # x tile
                  const((obs, hp)), const((1, hp)),             # w1, b1
                  const((hp, hp)), const((1, hp)),              # w2, b2
                  const((hp, act)), const((1, act))],           # w3, b3
        out_specs=pl.BlockSpec((tb, act), lambda i: (i, 0)),    # lane-narrow output
        compiler_params=pltpu.CompilerParams(
            dimension_semantics=("parallel",)),
        cost_estimate=cost,
    )(kp["a1"], kp["a2"],
      x,
      kp["w1"], kp["b1"], kp["w2"], kp["b2"], kp["w3"], kp["b3"])

    return out_p[:B, :]


# ----------------------------------------------------------------------------
# Init + pure-JAX reference (mirrors PyTorch module / defaults)
# ----------------------------------------------------------------------------
def init_params(key, obs, act, h1, h2):
    ks = jax.random.split(key, 3)

    def lin(k, fan_in, fan_out):
        bound = 1.0 / jnp.sqrt(fan_in)
        kw, kb = jax.random.split(k)
        w = jax.random.uniform(kw, (fan_in, fan_out), jnp.float32, -bound, bound)
        b = jax.random.uniform(kb, (1, fan_out), jnp.float32, -bound, bound)
        return w, b

    w1, b1 = lin(ks[0], obs, h1)
    w2, b2 = lin(ks[1], h1, h2)
    w3, b3 = lin(ks[2], h2, act)
    # PyTorch PReLU default: single parameter, value 0.25.
    a1 = jnp.array([0.25], dtype=jnp.float32)
    a2 = jnp.array([0.25], dtype=jnp.float32)
    return {"w1": w1, "b1": b1, "w2": w2, "b2": b2, "w3": w3, "b3": b3,
            "a1": a1, "a2": a2}


def reference_forward(x, p):
    sq = jnp.sum(x * x, axis=1, keepdims=True)
    xn = x / jnp.maximum(jnp.sqrt(sq), 1e-12)
    h1 = xn @ p["w1"] + p["b1"]
    h1 = jnp.maximum(h1, 0.0) + p["a1"][0] * jnp.minimum(h1, 0.0)
    h2 = h1 @ p["w2"] + p["b2"]
    h2 = jnp.maximum(h2, 0.0) + p["a2"][0] * jnp.minimum(h2, 0.0)
    return h2 @ p["w3"] + p["b3"]


if __name__ == "__main__":
    # LunarLander discrete: observation_space_size=8, action_space_size=4.
    OBS, ACT, H1, H2 = 8, 4, 64, 64

    key = jax.random.PRNGKey(0)
    kx1, kx2, kparam = jax.random.split(key, 3)
    params = init_params(kparam, OBS, ACT, H1, H2)

    # Pad once (f32 path for exact PyTorch parity, bf16 path for speed).
    kp_f32 = pad_params(params, jnp.float32)
    kp_bf16 = pad_params(params, jnp.bfloat16)

    # 1) Tiny rollout-style batch (single grid step), f32 parity.
    x_small = jax.random.normal(kx1, (8, OBS), dtype=jnp.float32)
    out_small = jax.block_until_ready(agent_forward(x_small, kp_f32))
    ref_small = reference_forward(x_small, params)
    assert out_small.shape == (8, ACT)
    assert jnp.allclose(out_small, ref_small, atol=1e-5, rtol=1e-5), \
        "small-batch mismatch vs reference"

    # 2) Larger ragged batch exercising the batch grid, pipelining and padding.
    x_big = jax.random.normal(kx2, (200, OBS), dtype=jnp.float32)
    out_big = jax.block_until_ready(agent_forward(x_big, kp_f32, tb=64))
    ref_big = reference_forward(x_big, params)
    assert out_big.shape == (200, ACT)
    assert jnp.allclose(out_big, ref_big, atol=1e-5, rtol=1e-5), \
        "large-batch mismatch vs reference"

    # 3) bf16-weight fast path (single-pass MXU, f32 accumulation); >=2 grid
    #    steps chosen automatically for megacore/dual-TC sharding.
    out_bf = jax.block_until_ready(agent_forward(x_big, kp_bf16))
    assert out_bf.shape == (200, ACT)
    assert jnp.allclose(out_bf, ref_big, atol=3e-2, rtol=3e-2), \
        "bf16-weight path diverged beyond expected bf16 error"

    print("KERNEL_OK")
</pallas_src>

<mosaic_0001>
module attributes {stable_mosaic.version = 11 : i64} {
  func.func @agent_kernel(%arg0: i32, %arg1: memref<1xf32, #tpu.memory_space<smem>>, %arg2: memref<1xf32, #tpu.memory_space<smem>>, %arg3: memref<8x8xf32, #tpu.memory_space<vmem>>, %arg4: memref<8x128xf32, #tpu.memory_space<vmem>>, %arg5: memref<1x128xf32, #tpu.memory_space<vmem>>, %arg6: memref<128x128xf32, #tpu.memory_space<vmem>>, %arg7: memref<1x128xf32, #tpu.memory_space<vmem>>, %arg8: memref<128x4xf32, #tpu.memory_space<vmem>>, %arg9: memref<1x4xf32, #tpu.memory_space<vmem>>, %arg10: memref<8x4xf32, #tpu.memory_space<vmem>>) attributes {dimension_semantics = [#tpu.dimension_semantics<parallel>], iteration_bounds = array<i64: 1>, scalar_prefetch = 0 : i64, scratch_operands = 0 : i64, tpu.core_type = #tpu.core_type<tc>, window_params = [{transform_indices = @transform_0, window_bounds = array<i64: 1>}, {transform_indices = @transform_1, window_bounds = array<i64: 1>}, {transform_indices = @transform_2, window_bounds = array<i64: 8, 8>}, {pipeline_mode = #tpu.pipeline_mode<synchronous>, transform_indices = @transform_3, window_bounds = array<i64: 8, 128>}, {pipeline_mode = #tpu.pipeline_mode<synchronous>, transform_indices = @transform_4, window_bounds = array<i64: 1, 128>}, {pipeline_mode = #tpu.pipeline_mode<synchronous>, transform_indices = @transform_5, window_bounds = array<i64: 128, 128>}, {pipeline_mode = #tpu.pipeline_mode<synchronous>, transform_indices = @transform_6, window_bounds = array<i64: 1, 128>}, {pipeline_mode = #tpu.pipeline_mode<synchronous>, transform_indices = @transform_7, window_bounds = array<i64: 128, 4>}, {pipeline_mode = #tpu.pipeline_mode<synchronous>, transform_indices = @transform_8, window_bounds = array<i64: 1, 4>}, {transform_indices = @transform_9, window_bounds = array<i64: 8, 4>}]} {
    %c0 = arith.constant 0 : index
    %c0_0 = arith.constant 0 : index
    %0 = vector.load %arg3[%c0, %c0_0] : memref<8x8xf32, #tpu.memory_space<vmem>>, vector<8x8xf32>
    %1 = arith.mulf %0, %0 : vector<8x8xf32>
    %cst = arith.constant dense<0.000000e+00> : vector<8xf32>
    %2 = vector.multi_reduction <add>, %1, %cst [1] : vector<8x8xf32> to vector<8xf32>
    %3 = vector.shape_cast %2 : vector<8xf32> to vector<8x1xf32>
    %cst_1 = arith.constant 1.000000e-24 : f32
    %4 = vector.broadcast %cst_1 : f32 to vector<8x1xf32>
    %5 = arith.maximumf %3, %4 : vector<8x1xf32>
    %6 = math.rsqrt %5 : vector<8x1xf32>
    %c0_2 = arith.constant 0 : index
    %c0_3 = arith.constant 0 : index
    %7 = vector.load %arg4[%c0_2, %c0_3] : memref<8x128xf32, #tpu.memory_space<vmem>>, vector<8x128xf32>
    %cst_4 = arith.constant dense<0.000000e+00> : vector<8x128xf32>
    %8 = tpu.matmul %0, %7, %cst_4 {dimension_numbers = #tpu.dot_dimension_numbers<[1], [0], [0], [1], [0, 0, 1, 1], [], []>} : vector<8x8xf32>, vector<8x128xf32>, vector<8x128xf32> -> vector<8x128xf32>
    %9 = vector.broadcast %6 : vector<8x1xf32> to vector<8x128xf32>
    %10 = arith.mulf %8, %9 : vector<8x128xf32>
    %c0_5 = arith.constant 0 : index
    %c0_6 = arith.constant 0 : index
    %11 = vector.load %arg5[%c0_5, %c0_6] : memref<1x128xf32, #tpu.memory_space<vmem>>, vector<1x128xf32>
    %12 = vector.broadcast %11 : vector<1x128xf32> to vector<8x128xf32>
    %13 = arith.addf %10, %12 : vector<8x128xf32>
    %cst_7 = arith.constant 0.000000e+00 : f32
    %14 = vector.broadcast %cst_7 : f32 to vector<8x128xf32>
    %15 = arith.cmpf oge, %13, %14 : vector<8x128xf32>
    %c0_8 = arith.constant 0 : index
    %16 = memref.load %arg1[%c0_8] : memref<1xf32, #tpu.memory_space<smem>>
    %17 = vector.broadcast %16 : f32 to vector<8x128xf32>
    %18 = arith.mulf %17, %13 : vector<8x128xf32>
    %19 = arith.select %15, %13, %18 : vector<8x128xi1>, vector<8x128xf32>
    %c0_9 = arith.constant 0 : index
    %c0_10 = arith.constant 0 : index
    %20 = vector.load %arg6[%c0_9, %c0_10] : memref<128x128xf32, #tpu.memory_space<vmem>>, vector<128x128xf32>
    %cst_11 = arith.constant dense<0.000000e+00> : vector<8x128xf32>
    %21 = tpu.matmul %19, %20, %cst_11 {dimension_numbers = #tpu.dot_dimension_numbers<[1], [0], [0], [1], [0, 0, 1, 1], [], []>} : vector<8x128xf32>, vector<128x128xf32>, vector<8x128xf32> -> vector<8x128xf32>
    %c0_12 = arith.constant 0 : index
    %c0_13 = arith.constant 0 : index
    %22 = vector.load %arg7[%c0_12, %c0_13] : memref<1x128xf32, #tpu.memory_space<vmem>>, vector<1x128xf32>
    %23 = vector.broadcast %22 : vector<1x128xf32> to vector<8x128xf32>
    %24 = arith.addf %21, %23 : vector<8x128xf32>
    %cst_14 = arith.constant 0.000000e+00 : f32
    %25 = vector.broadcast %cst_14 : f32 to vector<8x128xf32>
    %26 = arith.cmpf oge, %24, %25 : vector<8x128xf32>
    %c0_15 = arith.constant 0 : index
    %27 = memref.load %arg2[%c0_15] : memref<1xf32, #tpu.memory_space<smem>>
    %28 = vector.broadcast %27 : f32 to vector<8x128xf32>
    %29 = arith.mulf %28, %24 : vector<8x128xf32>
    %30 = arith.select %26, %24, %29 : vector<8x128xi1>, vector<8x128xf32>
    %c0_16 = arith.constant 0 : index
    %c0_17 = arith.constant 0 : index
    %31 = vector.load %arg8[%c0_16, %c0_17] : memref<128x4xf32, #tpu.memory_space<vmem>>, vector<128x4xf32>
    %cst_18 = arith.constant dense<0.000000e+00> : vector<8x4xf32>
    %32 = tpu.matmul %30, %31, %cst_18 {dimension_numbers = #tpu.dot_dimension_numbers<[1], [0], [0], [1], [0, 0, 1, 1], [], []>} : vector<8x128xf32>, vector<128x4xf32>, vector<8x4xf32> -> vector<8x4xf32>
    %c0_19 = arith.constant 0 : index
    %c0_20 = arith.constant 0 : index
    %33 = vector.load %arg9[%c0_19, %c0_20] : memref<1x4xf32, #tpu.memory_space<vmem>>, vector<1x4xf32>
    %34 = vector.broadcast %33 : vector<1x4xf32> to vector<8x4xf32>
    %35 = arith.addf %32, %34 : vector<8x4xf32>
    %c0_21 = arith.constant 0 : index
    %c0_22 = arith.constant 0 : index
    %36 = vector.load %arg10[%c0_21, %c0_22] : memref<8x4xf32, #tpu.memory_space<vmem>>, vector<8x4xf32>
    tpu.vector_store %arg10[%c0_21, %c0_22], %35 {strides = array<i32>} : memref<8x4xf32, #tpu.memory_space<vmem>>, vector<8x4xf32>,
    return
  }
  func.func @transform_0(%arg0: i32) -> i32 {
    %c0_i32 = arith.constant 0 : i32
    %c0_i32_0 = arith.constant 0 : i32
    return %c0_i32 : i32
  }
  func.func @transform_1(%arg0: i32) -> i32 {
    %c0_i32 = arith.constant 0 : i32
    %c0_i32_0 = arith.constant 0 : i32
    return %c0_i32 : i32
  }
  func.func @transform_2(%arg0: i32) -> (i32, i32) {
    %c0_i32 = arith.constant 0 : i32
    %c0_i32_0 = arith.constant 0 : i32
    return %arg0, %c0_i32 : i32, i32
  }
  func.func @transform_3(%arg0: i32) -> (i32, i32) {
    %c0_i32 = arith.constant 0 : i32
    %c0_i32_0 = arith.constant 0 : i32
    %c0_i32_1 = arith.constant 0 : i32
    return %c0_i32, %c0_i32_0 : i32, i32
  }
  func.func @transform_4(%arg0: i32) -> (i32, i32) {
    %c0_i32 = arith.constant 0 : i32
    %c0_i32_0 = arith.constant 0 : i32
    %c0_i32_1 = arith.constant 0 : i32
    return %c0_i32, %c0_i32_0 : i32, i32
  }
  func.func @transform_5(%arg0: i32) -> (i32, i32) {
    %c0_i32 = arith.constant 0 : i32
    %c0_i32_0 = arith.constant 0 : i32
    %c0_i32_1 = arith.constant 0 : i32
    return %c0_i32, %c0_i32_0 : i32, i32
  }
  func.func @transform_6(%arg0: i32) -> (i32, i32) {
    %c0_i32 = arith.constant 0 : i32
    %c0_i32_0 = arith.constant 0 : i32
    %c0_i32_1 = arith.constant 0 : i32
    return %c0_i32, %c0_i32_0 : i32, i32
  }
  func.func @transform_7(%arg0: i32) -> (i32, i32) {
    %c0_i32 = arith.constant 0 : i32
    %c0_i32_0 = arith.constant 0 : i32
    %c0_i32_1 = arith.constant 0 : i32
    return %c0_i32, %c0_i32_0 : i32, i32
  }
  func.func @transform_8(%arg0: i32) -> (i32, i32) {
    %c0_i32 = arith.constant 0 : i32
    %c0_i32_0 = arith.constant 0 : i32
    %c0_i32_1 = arith.constant 0 : i32
    return %c0_i32, %c0_i32_0 : i32, i32
  }
  func.func @transform_9(%arg0: i32) -> (i32, i32) {
    %c0_i32 = arith.constant 0 : i32
    %c0_i32_0 = arith.constant 0 : i32
    return %arg0, %c0_i32 : i32, i32
  }
}

</mosaic_0001>

<bundles_post_ra>
// kernel: agent_forward.1
= control target key start
LH: loop header
LB: loop body
LE: loop exit
PB: predicated region body
PF: predicated region fallthrough
CT: control target
= control target key end

     0   :  { %vm36_vm0 = vcmask 64512   ;;  %v495_v0 = vmov 0.0   ;;  %vm496_vm1 = vmmov 0   ;;  %v497_v5 = vmov 0.0|0.0   ;;  %s689_s3 = inlined_call_operand.vmem [shape: f32[8,128], index: 3, kind: input, shape index: {}]   ;;  %s690_s2 = inlined_call_operand.vmem [shape: f32[8,8], index: 2, kind: input, shape index: {}]   ;;  %s691_s5 = inlined_call_operand.vmem [shape: f32[128,128], index: 5, kind: input, shape index: {}]   ;;  %s692_s7 = inlined_call_operand.vmem [shape: f32[128,4], index: 7, kind: input, shape index: {}]   ;;  %s693_s4 = inlined_call_operand.vmem [shape: f32[1,128], index: 4, kind: input, shape index: {}]   ;;  %s694_s0 = inlined_call_operand.<no memory space> [shape: f32[1], index: 0, kind: input, shape index: {}]   ;;  %s695_s6 = inlined_call_operand.vmem [shape: f32[1,128], index: 6, kind: input, shape index: {}]   ;;  %s696_s1 = inlined_call_operand.<no memory space> [shape: f32[1], index: 1, kind: input, shape index: {}]   ;;  %s697_s8 = inlined_call_operand.vmem [shape: f32[1,4], index: 8, kind: input, shape index: {}]   ;;  %s698_s9 = inlined_call_operand.vmem [shape: f32[8,4], index: 9, kind: output, shape index: {}]  }
   0x1   :  { %367 = vmatprep.subr.mxu0 %v495_v0  ;;  %v42_v1 = vld [vmem:[%s689_s3] sm:$0xff]  ;;  %369 = vmatprep.mubr.msk.f32.mxu0 %vm496_vm1, %v495_v0  ;;  %v131_v6 = vld [vmem:[%s691_s5 + $0x8] sm:$0xff]  ;;  %v132_v7 = vld [vmem:[%s691_s5 + $0x10] sm:$0xff]  ;;  %v127_v58 = vstv %s694_s0  ;;  %vm321_vm4 = vcmask 31744  }
   0x2   :  { %v34_v2 = vld [vmem:[%s690_s2] sm:$0xff]  ;;  %368 = vmatpush3.msra.mxu0 %v42_v1  ;;  %442 = vmatprep.subr.bf16.mxu1 %v497_v5  ;;  %v133_v8 = vld [vmem:[%s691_s5 + $0x18] sm:$0xff]  ;;  %v135_v13 = vld [vmem:[%s691_s5 + $0x28] sm:$0xff] }
   0x3   :  { %v130_v3 = vld [vmem:[%s691_s5] sm:$0xff]  ;;  %v35_v4 = vmul.f32 %v34_v2, %v34_v2  ;;  %370 = vmatmul.mubr.msk.f32.vlgmr.msra.gmra.mrb[0].mxu0 %vm36_vm0, %v34_v2  ;;  %404 = vmatprep.mubr.msk.f32.mxu1 %vm496_vm1, %v495_v0  ;;  %v446_v11 = vpack.c.bf16 %v133_v8, %v132_v7  ;;  %v136_v15 = vld [vmem:[%s691_s5 + $0x30] sm:$0xff]  ;;  %v137_v16 = vld [vmem:[%s691_s5 + $0x38] sm:$0xff] }
   0x4   :  { %v443_v9 = vpack.c.bf16 %v131_v6, %v130_v3  ;;  %466 = vmatprep.subr.bf16.mxu0 %v497_v5  ;;  %439 = vmatprep.mubr.msk.f32.mxu0 %vm496_vm1, %v495_v0  ;;  %v134_v12 = vld [vmem:[%s691_s5 + $0x20] sm:$0xff]  ;;  %v452_v18 = vpack.c.bf16 %v137_v16, %v136_v15  ;;  %v139_v19 = vld [vmem:[%s691_s5 + $0x48] sm:$0xff]  ;;  %v140_v21 = vld [vmem:[%s691_s5 + $0x50] sm:$0xff]  ;;  %v225_v3 = vstv %s696_s1 }
   0x5   :  { %v37_v10 = vsel %vm36_vm0, %v35_v4, 0.0  ;;  %v449_v14 = vpack.c.bf16 %v135_v13, %v134_v12  ;;  %v138_v17 = vld [vmem:[%s691_s5 + $0x40] sm:$0xff]  ;;  %v141_v22 = vld [vmem:[%s691_s5 + $0x58] sm:$0xff]  ;;  %v143_v25 = vld [vmem:[%s691_s5 + $0x68] sm:$0xff] }
   0x6   :  { %38 = vadd.xlane.f32.xlu0 %v37_v10  ;;  %444 = vmatpush3.bf16.msra.mxu1 %v443_v9  ;;  %v455_v20 = vpack.c.bf16 %v139_v19, %v138_v17  ;;  %v458_v23 = vpack.c.bf16 %v141_v22, %v140_v21  ;;  %v142_v24 = vld [vmem:[%s691_s5 + $0x60] sm:$0xff]  ;;  %v144_v27 = vld [vmem:[%s691_s5 + $0x70] sm:$0xff]  ;;  %v145_v28 = vld [vmem:[%s691_s5 + $0x78] sm:$0xff] }
   0x7   :  { %445 = vmatprep.subr.bf16.mxu1 %v497_v5  ;;  %v461_v26 = vpack.c.bf16 %v143_v25, %v142_v24  ;;  %v464_v29 = vpack.c.bf16 %v145_v28, %v144_v27  ;;  %v228_v30 = vld [vmem:[%s692_s7] sm:$0xff]  ;;  %v229_v31 = vld [vmem:[%s692_s7 + $0x8] sm:$0xff]  ;;  %v230_v32 = vld [vmem:[%s692_s7 + $0x10] sm:$0xff] }
   0x8   :  { %v467_v33 = vpack.c.bf16 %v229_v31, %v228_v30  ;;  %v231_v34 = vld [vmem:[%s692_s7 + $0x18] sm:$0xff]  ;;  %v232_v36 = vld [vmem:[%s692_s7 + $0x20] sm:$0xff]  ;;  %v233_v37 = vld [vmem:[%s692_s7 + $0x28] sm:$0xff] }
   0x9   :  { %v470_v35 = vpack.c.bf16 %v231_v34, %v230_v32  ;;  %v473_v38 = vpack.c.bf16 %v233_v37, %v232_v36  ;;  %v234_v39 = vld [vmem:[%s692_s7 + $0x30] sm:$0xff]  ;;  %v235_v40 = vld [vmem:[%s692_s7 + $0x38] sm:$0xff]  ;;  %v236_v42 = vld [vmem:[%s692_s7 + $0x40] sm:$0xff] }
   0xa   :  { %447 = vmatpush3.bf16.msra.mxu1 %v446_v11  ;;  %468 = vmatpush3.bf16.msra.mxu0 %v467_v33  ;;  %v476_v41 = vpack.c.bf16 %v235_v40, %v234_v39  ;;  %v237_v43 = vld [vmem:[%s692_s7 + $0x48] sm:$0xff]  ;;  %v238_v45 = vld [vmem:[%s692_s7 + $0x50] sm:$0xff]  ;;  %v239_v46 = vld [vmem:[%s692_s7 + $0x58] sm:$0xff] }
   0xb   :  { %448 = vmatprep.subr.bf16.mxu1 %v497_v5  ;;  %469 = vmatprep.subr.bf16.mxu0 %v497_v5  ;;  %v479_v44 = vpack.c.bf16 %v237_v43, %v236_v42  ;;  %v482_v47 = vpack.c.bf16 %v239_v46, %v238_v45  ;;  %v240_v48 = vld [vmem:[%s692_s7 + $0x60] sm:$0xff]  ;;  %v241_v49 = vld [vmem:[%s692_s7 + $0x68] sm:$0xff]  ;;  %v242_v62 = vld [vmem:[%s692_s7 + $0x70] sm:$0xff] }
   0xc   :  { %v485_v50 = vpack.c.bf16 %v241_v49, %v240_v48  ;;  %v328_v55 = vld [vmem:[%s693_s4] ss:$0 sm:$0xff]  ;;  %v243_v63 = vld [vmem:[%s692_s7 + $0x78] sm:$0xff] }
   0xd   :  { %v488_v0 = vpack.c.bf16 %v243_v63, %v242_v62  ;;  %v329_v1 = vld [vmem:[%s695_s6] ss:$0 sm:$0xff] }
   0xe   :  { %450 = vmatpush3.bf16.msra.mxu1 %v449_v14  ;;  %471 = vmatpush3.bf16.msra.mxu0 %v470_v35  ;;  %v330_v8 = vld [vmem:[%s697_s8] ss:$0 sm:$0xff] }
   0xf   :  { %451 = vmatprep.subr.bf16.mxu1 %v497_v5  ;;  %472 = vmatprep.subr.bf16.mxu0 %v497_v5 }
  0x12   :  { %453 = vmatpush3.bf16.msra.mxu1 %v452_v18  ;;  %474 = vmatpush3.bf16.msra.mxu0 %v473_v38 }
  0x13   :  { %454 = vmatprep.subr.bf16.mxu1 %v497_v5  ;;  %475 = vmatprep.subr.bf16.mxu0 %v497_v5 }
  0x16   :  { %456 = vmatpush3.bf16.msra.mxu1 %v455_v20  ;;  %477 = vmatpush3.bf16.msra.mxu0 %v476_v41 }
  0x17   :  { %457 = vmatprep.subr.bf16.mxu1 %v497_v5  ;;  %478 = vmatprep.subr.bf16.mxu0 %v497_v5 }
  0x1a   :  { %459 = vmatpush3.bf16.msra.mxu1 %v458_v23  ;;  %480 = vmatpush3.bf16.msra.mxu0 %v479_v44 }
  0x1b   :  { %460 = vmatprep.subr.bf16.mxu1 %v497_v5  ;;  %481 = vmatprep.subr.bf16.mxu0 %v497_v5 }
  0x1e   :  { %462 = vmatpush3.bf16.msra.mxu1 %v461_v26  ;;  %483 = vmatpush3.bf16.msra.mxu0 %v482_v47 }
  0x1f   :  { %463 = vmatprep.subr.bf16.mxu1 %v497_v5  ;;  %484 = vmatprep.subr.bf16.mxu0 %v497_v5 }
  0x22   :  { %465 = vmatpush3.bf16.msra.mxu1 %v464_v29  ;;  %486 = vmatpush3.bf16.msra.mxu0 %v485_v50 }
  0x23   :  { %487 = vmatprep.subr.bf16.mxu0 %v497_v5 }
  0x26   :  { %489 = vmatpush3.bf16.msra.mxu0 %v488_v0 }
  0x93   :  { %v39_v51 = vpop.xlane.xlu0 %38 }
  0x94   :  { %v40_v52 = vmax.f32 %v39_v51, 1e-24 }
  0x96   :  { %493 = vrsqrt.f32 %v40_v52 }
  0xa0   :  { %v494_v53 = vpop.eup %493 }
  0xd6   :  { %v112_v54 = vpop.f32.mrb[0].mxu0 }
  0xd7   :  { %v116_v56 = vmul.f32 %v494_v53, %v112_v54  ;;  %v371_v57 = vpop.f32.mrb[1].mxu0 }
  0xd9   :  { %v124_v59 = vadd.f32 %v328_v55, %v116_v56 }
  0xdb   :  { %vm125_vm2 = vcmp.ge.f32.partialorder %v124_v59, 0.0  ;;  %v128_v60 = vmul.f32 %v127_v58, %v124_v59 }
  0xdd   :  { %v129_v61 = vsel %vm125_vm2, %v124_v59, %v128_v60 }
  0xde   :  { %405 = vmatmul.mubr.f32.vlgmr.msra.gmra.mrb[0].mxu1 %v129_v61 }
 0x1b1   :  { %v219_v2 = vpop.f32.mrb[0].mxu1 }
 0x1b2   :  { %v220_v4 = vadd.f32 %v329_v1, %v219_v2  ;;  %v406_v5 = vpop.f32.mrb[1].mxu1 }
 0x1b4   :  { %vm223_vm3 = vcmp.ge.f32.partialorder %v220_v4, 0.0  ;;  %v226_v6 = vmul.f32 %v225_v3, %v220_v4 }
 0x1b6   :  { %v227_v7 = vsel %vm223_vm3, %v220_v4, %v226_v6 }
 0x1b7   :  { %440 = vmatmul.mubr.f32.vlgmr.msra.gmra.mrb[2].mxu0 %v227_v7 }
 0x28a   :  { %v317_v9 = vpop.f32.mrb[2].mxu0 }
 0x28b   :  { %v318_v10 = vadd.f32 %v330_v8, %v317_v9  ;;  %v441_v11 = vpop.f32.mrb[3].mxu0 }
 0x28d   :  { %322 = vst.msk [vmem:[%s698_s9] sm:$0xff] %vm321_vm4, %v318_v10 }

</bundles_post_ra>
